<compile_context>
chip_gen: v5e
topology: v5e:2x2
jax: 0.10.0
libtpu: 0.0.40
codegen_flags: <defaults>
</compile_context>

<pallas_src>
import functools

import jax
import jax.numpy as jnp
from jax.experimental import pallas as pl
from jax.experimental.pallas import tpu as pltpu


def _round_up(x, m):
    return ((x + m - 1) // m) * m


# ---------------------------------------------------------------------------
# Fused MLP kernel: one M-tile through the whole layer chain.
# ---------------------------------------------------------------------------
def _fused_mlp_kernel(*refs, n_layers: int):
    # refs = (x_ref, w0_ref, b0_ref, w1_ref, b1_ref, ..., o_ref)
    x_ref = refs[0]
    o_ref = refs[-1]
    wb = refs[1:-1]

    h = x_ref[...]  # (TILE_M, d_in_pad) bf16
    for i in range(n_layers):
        w = wb[2 * i][...]        # (d_in_pad, d_out_pad) bf16, VMEM-resident
        b = wb[2 * i + 1][...]    # (1, d_out_pad) f32,  VMEM-resident
        y = jnp.dot(h, w, preferred_element_type=jnp.float32) + b
        if i != n_layers - 1:
            h = jnp.maximum(y, 0.0).astype(jnp.bfloat16)
        else:
            h = y
    o_ref[...] = h.astype(o_ref.dtype)


def _fused_mlp_pallas(x2d, weights_p, biases_p, tile_m):
    """x2d: (M_pad, d_in_pad) bf16, M_pad % tile_m == 0.  Returns (M_pad, d_out_pad) f32."""
    m_pad, d_in_pad = x2d.shape
    d_out_pad = weights_p[-1].shape[1]
    n_layers = len(weights_p)
    grid = (m_pad // tile_m,)

    in_specs = [pl.BlockSpec((tile_m, d_in_pad), lambda i: (i, 0))]
    inputs = [x2d]
    for w, b in zip(weights_p, biases_p):
        in_specs.append(pl.BlockSpec(w.shape, lambda i: (0, 0)))  # resident
        in_specs.append(pl.BlockSpec(b.shape, lambda i: (0, 0)))  # resident
        inputs.append(w)
        inputs.append(b)
    out_specs = pl.BlockSpec((tile_m, d_out_pad), lambda i: (i, 0))

    # --- VMEM budget estimate (double-buffered activation tiles + resident
    #     weights/biases + f32 intermediates), with headroom, capped for v7x. ---
    max_dim = max([d_in_pad] + [w.shape[1] for w in weights_p])
    est = (
        2 * tile_m * d_in_pad * 2          # input tile, bf16, 2 buffers
        + 2 * tile_m * d_out_pad * 4       # output tile, f32, 2 buffers
        + sum(2 * w.size * 2 for w in weights_p)   # bf16 weights (2 bufs worst case)
        + sum(2 * b.size * 4 for b in biases_p)    # f32 biases
        + 2 * tile_m * max_dim * 4         # intermediate activations (f32)
    )
    vmem_limit = int(min(max(2 * est, 32 << 20), 48 << 20))

    flops = 2 * m_pad * sum(w.shape[0] * w.shape[1] for w in weights_p)
    bytes_accessed = (
        x2d.size * 2
        + sum(w.size * 2 for w in weights_p)
        + sum(b.size * 4 for b in biases_p)
        + m_pad * d_out_pad * 4
    )

    return pl.pallas_call(
        functools.partial(_fused_mlp_kernel, n_layers=n_layers),
        out_shape=jax.ShapeDtypeStruct((m_pad, d_out_pad), jnp.float32),
        grid=grid,
        in_specs=in_specs,
        out_specs=out_specs,
        compiler_params=pltpu.CompilerParams(
            dimension_semantics=("parallel",),
            vmem_limit_bytes=vmem_limit,
        ),
        cost_estimate=pl.CostEstimate(
            flops=int(flops), transcendentals=0, bytes_accessed=int(bytes_accessed)
        ),
    )(*inputs)


# ---------------------------------------------------------------------------
# FCHidden2dz forward
# ---------------------------------------------------------------------------
class FCHidden2dzPallas:
    LANE = 128        # feature dims padded to multiples of 128 (lane-dense)
    MAX_TILE_M = 512  # f32-roofline-friendly M tile; fits v7x's smaller VMEM

    def __init__(self, input_shape, output_shape, hidden_sizes=(), key=None):
        self.input_shape = tuple(int(s) for s in input_shape)
        self.output_shape = tuple(int(s) for s in output_shape)
        in_size = 1
        for s in self.input_shape:
            in_size *= s
        out_size = 1
        for s in self.output_shape:
            out_size *= s
        self.in_size = in_size
        self.out_size = out_size

        sizes = [in_size, *[int(h) for h in hidden_sizes], out_size]
        sizes_pad = [_round_up(s, self.LANE) for s in sizes]
        self.d_in_pad = sizes_pad[0]
        self.d_out_pad = sizes_pad[-1]

        if key is None:
            key = jax.random.PRNGKey(0)

        # Unpadded f32 params (for reference), padded bf16/f32 params (for kernel).
        self.weights, self.biases = [], []
        self.weights_p, self.biases_p = [], []
        for (fan_in, fan_out), (fi_p, fo_p) in zip(
            zip(sizes, sizes[1:]), zip(sizes_pad, sizes_pad[1:])
        ):
            key, kw, kb = jax.random.split(key, 3)
            bound = 1.0 / (fan_in ** 0.5)
            # Stored as (in, out) == PyTorch weight.T (matmul-friendly).
            w = jax.random.uniform(kw, (fan_in, fan_out), jnp.float32, -bound, bound)
            b = jax.random.uniform(kb, (fan_out,), jnp.float32, -bound, bound)
            self.weights.append(w)
            self.biases.append(b)

            w_p = jnp.zeros((fi_p, fo_p), jnp.bfloat16)
            w_p = w_p.at[:fan_in, :fan_out].set(w.astype(jnp.bfloat16))
            b_p = jnp.zeros((1, fo_p), jnp.float32)
            b_p = b_p.at[0, :fan_out].set(b)
            self.weights_p.append(w_p)
            self.biases_p.append(b_p)

    def __call__(self, x):
        # x: (T, N, *input_shape)  (input_shape is 1-D, as nn.Linear requires)
        T, N = x.shape[0], x.shape[1]
        assert tuple(x.shape[2:]) == self.input_shape
        M = T * N

        x2d = x.reshape(M, -1).astype(jnp.bfloat16)
        # Pad features to lane multiple.
        if self.d_in_pad > self.in_size:
            x2d = jnp.pad(x2d, ((0, 0), (0, self.d_in_pad - self.in_size)))
        # Pad rows to a multiple of the M tile (sublane multiple of 8 guaranteed).
        tile_m = min(self.MAX_TILE_M, _round_up(M, 8))
        m_pad = _round_up(M, tile_m)
        if m_pad > M:
            x2d = jnp.pad(x2d, ((0, m_pad - M), (0, 0)))

        y = _fused_mlp_pallas(x2d, self.weights_p, self.biases_p, tile_m)
        y = y[:M, : self.out_size]
        return y.reshape((T, N) + self.output_shape)


# ---------------------------------------------------------------------------
# References for correctness checking
# ---------------------------------------------------------------------------
def _reference_bf16(model, x):
    """Emulates the kernel's numerics: bf16 matmul inputs, f32 accumulation."""
    T, N = x.shape[0], x.shape[1]
    h = x.reshape(T * N, -1)
    n = len(model.weights)
    for i, (w, b) in enumerate(zip(model.weights, model.biases)):
        y = jnp.dot(
            h.astype(jnp.bfloat16),
            w.astype(jnp.bfloat16),
            preferred_element_type=jnp.float32,
        ) + b
        if i != n - 1:
            y = jnp.maximum(y, 0.0)
        h = y
    return h.reshape((T, N) + model.output_shape)


def _reference_f32(model, x):
    T, N = x.shape[0], x.shape[1]
    h = x.reshape(T * N, -1).astype(jnp.float32)
    n = len(model.weights)
    for i, (w, b) in enumerate(zip(model.weights, model.biases)):
        h = h @ w + b
        if i != n - 1:
            h = jnp.maximum(h, 0.0)
    return h.reshape((T, N) + model.output_shape)


if __name__ == "__main__":
    key = jax.random.PRNGKey(0)
    kx, kp = jax.random.split(key)

    # Small shapes consistent with the module's forward:
    #   input_shape = (16,), hidden = (32,), output_shape = (4, 8) (prod = 32)
    T, N = 8, 2
    input_shape = (16,)
    hidden_sizes = (32,)
    output_shape = (4, 8)

    x = jax.random.normal(kx, (T, N) + input_shape, dtype=jnp.float32)

    model = FCHidden2dzPallas(input_shape, output_shape, hidden_sizes, key=kp)

    out = model(x)
    out = jax.block_until_ready(out)
    assert out.shape == (T, N) + output_shape, out.shape

    ref_bf16 = _reference_bf16(model, x)
    ref_f32 = _reference_f32(model, x)
    assert jnp.allclose(out, ref_bf16, atol=1e-2, rtol=1e-2), "mismatch vs bf16 reference"
    assert jnp.allclose(out, ref_f32, atol=5e-2, rtol=5e-2), "mismatch vs f32 reference"

    print("KERNEL_OK")
</pallas_src>

<mosaic_0001>
module attributes {stable_mosaic.version = 11 : i64} {
  func.func @_fused_mlp_kernel(%arg0: i32, %arg1: memref<16x128xbf16, #tpu.memory_space<vmem>>, %arg2: memref<128x128xbf16, #tpu.memory_space<vmem>>, %arg3: memref<1x128xf32, #tpu.memory_space<vmem>>, %arg4: memref<128x128xbf16, #tpu.memory_space<vmem>>, %arg5: memref<1x128xf32, #tpu.memory_space<vmem>>, %arg6: memref<16x128xf32, #tpu.memory_space<vmem>>) attributes {dimension_semantics = [#tpu.dimension_semantics<parallel>], iteration_bounds = array<i64: 1>, scalar_prefetch = 0 : i64, scratch_operands = 0 : i64, tpu.core_type = #tpu.core_type<tc>, window_params = [{transform_indices = @transform_0, window_bounds = array<i64: 16, 128>}, {pipeline_mode = #tpu.pipeline_mode<synchronous>, transform_indices = @transform_1, window_bounds = array<i64: 128, 128>}, {pipeline_mode = #tpu.pipeline_mode<synchronous>, transform_indices = @transform_2, window_bounds = array<i64: 1, 128>}, {pipeline_mode = #tpu.pipeline_mode<synchronous>, transform_indices = @transform_3, window_bounds = array<i64: 128, 128>}, {pipeline_mode = #tpu.pipeline_mode<synchronous>, transform_indices = @transform_4, window_bounds = array<i64: 1, 128>}, {transform_indices = @transform_5, window_bounds = array<i64: 16, 128>}]} {
    %c0 = arith.constant 0 : index
    %c0_0 = arith.constant 0 : index
    %0 = vector.load %arg1[%c0, %c0_0] : memref<16x128xbf16, #tpu.memory_space<vmem>>, vector<16x128xbf16>
    %c0_1 = arith.constant 0 : index
    %c0_2 = arith.constant 0 : index
    %1 = vector.load %arg2[%c0_1, %c0_2] : memref<128x128xbf16, #tpu.memory_space<vmem>>, vector<128x128xbf16>
    %c0_3 = arith.constant 0 : index
    %c0_4 = arith.constant 0 : index
    %2 = vector.load %arg3[%c0_3, %c0_4] : memref<1x128xf32, #tpu.memory_space<vmem>>, vector<1x128xf32>
    %cst = arith.constant dense<0.000000e+00> : vector<16x128xf32>
    %3 = tpu.matmul %0, %1, %cst {dimension_numbers = #tpu.dot_dimension_numbers<[1], [0], [0], [1], [0, 0, 1, 1], [], []>} : vector<16x128xbf16>, vector<128x128xbf16>, vector<16x128xf32> -> vector<16x128xf32>
    %4 = vector.broadcast %2 : vector<1x128xf32> to vector<16x128xf32>
    %5 = arith.addf %3, %4 : vector<16x128xf32>
    %cst_5 = arith.constant 0.000000e+00 : f32
    %6 = vector.broadcast %cst_5 : f32 to vector<16x128xf32>
    %7 = arith.maximumf %5, %6 : vector<16x128xf32>
    %8 = arith.truncf %7 : vector<16x128xf32> to vector<16x128xbf16>
    %c0_6 = arith.constant 0 : index
    %c0_7 = arith.constant 0 : index
    %9 = vector.load %arg4[%c0_6, %c0_7] : memref<128x128xbf16, #tpu.memory_space<vmem>>, vector<128x128xbf16>
    %c0_8 = arith.constant 0 : index
    %c0_9 = arith.constant 0 : index
    %10 = vector.load %arg5[%c0_8, %c0_9] : memref<1x128xf32, #tpu.memory_space<vmem>>, vector<1x128xf32>
    %cst_10 = arith.constant dense<0.000000e+00> : vector<16x128xf32>
    %11 = tpu.matmul %8, %9, %cst_10 {dimension_numbers = #tpu.dot_dimension_numbers<[1], [0], [0], [1], [0, 0, 1, 1], [], []>} : vector<16x128xbf16>, vector<128x128xbf16>, vector<16x128xf32> -> vector<16x128xf32>
    %12 = vector.broadcast %10 : vector<1x128xf32> to vector<16x128xf32>
    %13 = arith.addf %11, %12 : vector<16x128xf32>
    %c0_11 = arith.constant 0 : index
    %c0_12 = arith.constant 0 : index
    %14 = vector.load %arg6[%c0_11, %c0_12] : memref<16x128xf32, #tpu.memory_space<vmem>>, vector<16x128xf32>
    tpu.vector_store %arg6[%c0_11, %c0_12], %13 {strides = array<i32>} : memref<16x128xf32, #tpu.memory_space<vmem>>, vector<16x128xf32>,
    return
  }
  func.func @transform_0(%arg0: i32) -> (i32, i32) {
    %c0_i32 = arith.constant 0 : i32
    %c0_i32_0 = arith.constant 0 : i32
    return %arg0, %c0_i32 : i32, i32
  }
  func.func @transform_1(%arg0: i32) -> (i32, i32) {
    %c0_i32 = arith.constant 0 : i32
    %c0_i32_0 = arith.constant 0 : i32
    %c0_i32_1 = arith.constant 0 : i32
    return %c0_i32, %c0_i32_0 : i32, i32
  }
  func.func @transform_2(%arg0: i32) -> (i32, i32) {
    %c0_i32 = arith.constant 0 : i32
    %c0_i32_0 = arith.constant 0 : i32
    %c0_i32_1 = arith.constant 0 : i32
    return %c0_i32, %c0_i32_0 : i32, i32
  }
  func.func @transform_3(%arg0: i32) -> (i32, i32) {
    %c0_i32 = arith.constant 0 : i32
    %c0_i32_0 = arith.constant 0 : i32
    %c0_i32_1 = arith.constant 0 : i32
    return %c0_i32, %c0_i32_0 : i32, i32
  }
  func.func @transform_4(%arg0: i32) -> (i32, i32) {
    %c0_i32 = arith.constant 0 : i32
    %c0_i32_0 = arith.constant 0 : i32
    %c0_i32_1 = arith.constant 0 : i32
    return %c0_i32, %c0_i32_0 : i32, i32
  }
  func.func @transform_5(%arg0: i32) -> (i32, i32) {
    %c0_i32 = arith.constant 0 : i32
    %c0_i32_0 = arith.constant 0 : i32
    return %arg0, %c0_i32 : i32, i32
  }
}

</mosaic_0001>

<bundles_post_ra>
// kernel: tpu_custom_call.1
= control target key start
LH: loop header
LB: loop body
LE: loop exit
PB: predicated region body
PF: predicated region fallthrough
CT: control target
= control target key end

     0   :  { %10 = vsyncpa [#allocation3], 0  ;;  %s518_s0 = inlined_call_operand.hbm [shape: bf16[16,128], index: 0, kind: input, shape index: {}]   ;;  %s519_s1 = inlined_call_operand.hbm [shape: bf16[128,128], index: 1, kind: input, shape index: {}]   ;;  %s520_s2 = inlined_call_operand.vmem [shape: f32[1,128], index: 2, kind: input, shape index: {}]   ;;  %s521_s3 = inlined_call_operand.hbm [shape: bf16[128,128], index: 3, kind: input, shape index: {}]   ;;  %s522_s4 = inlined_call_operand.vmem [shape: f32[1,128], index: 4, kind: input, shape index: {}]   ;;  %s523_s5 = inlined_call_operand.hbm [shape: f32[16,128], index: 5, kind: output, shape index: {}]  }
   0x1   :  { %11 = vsyncpa [#allocation6], 0 }
   0x2   :  { %12 = vsyncpa [#allocation4], 0  ;;  %s30_s20 = sshll.u32 %s519_s1, 4  ;;  %s462_s21 = smov [#allocation5]   ;;  %s31_s20 = int_to_ptr.hbm [resolvable:$true] %s30_s20 }
   0x3   :  { %s32_s22 = sshll.u32 %s462_s21, 4  ;;  %s17_s25 = sshll.u32 %s518_s0, 4  ;;  %s33_s22 = int_to_ptr.vmem [resolvable:$true] %s32_s22  ;;  %s18_s25 = int_to_ptr.hbm [resolvable:$true] %s17_s25 }
   0x4   :  { %s463_s26 = smov 64   ;;  %s464_s27 = smov 4  }
   0x5   :  { %38 = dma.hbm_to_vmem [thread:$0]  %s31_s20, 1024, %s33_s22, [#allocation6], %s463_s26, %s463_s26, %s464_s27  }
   0x6   :  { %s465_s28 = smov [#allocation2]   ;;  %s45_s7 = sshll.u32 %s521_s3, 4  ;;  %s46_s7 = int_to_ptr.hbm [resolvable:$true] %s45_s7 }
   0x7   :  { %s19_s29 = sshll.u32 %s465_s28, 4  ;;  %s466_s1 = smov [#allocation7]   ;;  %s20_s29 = int_to_ptr.vmem [resolvable:$true] %s19_s29 }
   0x8   :  { %25 = dma.hbm_to_vmem [thread:$0]  %s18_s25, 128, %s20_s29, [#allocation3], %s463_s26, %s463_s26, %s464_s27  }
   0x9   :  { %s47_s8 = sshll.u32 %s466_s1, 4  ;;  %s48_s8 = int_to_ptr.vmem [resolvable:$true] %s47_s8 }
   0xa   :  { %53 = dma.hbm_to_vmem [thread:$0]  %s46_s7, 1024, %s48_s8, [#allocation6], %s463_s26, %s463_s26, %s464_s27  }
   0xb   :  { %456 = dma.done.wait [#allocation3], 128  }
   0xc   :  { %457 = vsyncadd [#allocation3], 4294967168 }
   0xd   :  { %458 = dma.done.wait [#allocation6], 2048  }
   0xe   :  { %459 = vsyncadd [#allocation6], 4294965248  ;;  %v341_v0 = vld [vmem:[#allocation5 + $0x38] sm:$0xff]  ;;  %v340_v1 = vld [vmem:[#allocation5 + $0x30] sm:$0xff]  ;;  %s467_s11 = smov [#allocation8]   ;;  %s468_s15 = smov 128  }
   0xf   :  { %144 = vmatpush.bf16.msra.mxu0 %v341_v0  ;;  %v349_v2 = vld [vmem:[#allocation7 + $0x38] sm:$0xff]  ;;  %v348_v3 = vld [vmem:[#allocation7 + $0x30] sm:$0xff]  ;;  %v339_v4 = vld [vmem:[#allocation5 + $0x28] sm:$0xff]  ;;  %s249_s12 = sshll.u32 %s467_s11, 4  ;;  %s469_s16 = smov 8   ;;  %s250_s12 = int_to_ptr.vmem [resolvable:$true] %s249_s12 }
  0x10   :  { %229 = vmatpush.bf16.msra.mxu1 %v349_v2  ;;  %v347_v5 = vld [vmem:[#allocation7 + $0x28] sm:$0xff]  ;;  %v338_v6 = vld [vmem:[#allocation5 + $0x20] sm:$0xff]  ;;  %v337_v8 = vld [vmem:[#allocation5 + $0x18] sm:$0xff] }
  0x11   :  { %v346_v7 = vld [vmem:[#allocation7 + $0x20] sm:$0xff]  ;;  %v336_v9 = vld [vmem:[#allocation5 + $0x10] sm:$0xff]  ;;  %v335_v10 = vld [vmem:[#allocation5 + $0x8] sm:$0xff] }
  0x12   :  { %v334_v11 = vld [vmem:[#allocation5] sm:$0xff]  ;;  %v333_v12 = vld [vmem:[#allocation2] sm:$0xff]  ;;  %v344_v14 = vld [vmem:[#allocation7 + $0x10] sm:$0xff] }
  0x13   :  { %145 = vmatpush.bf16.msra.mxu0 %v340_v1  ;;  %v345_v13 = vld [vmem:[#allocation7 + $0x18] sm:$0xff]  ;;  %v343_v15 = vld [vmem:[#allocation7 + $0x8] sm:$0xff]  ;;  %v342_v16 = vld [vmem:[#allocation7] sm:$0xff] }
  0x14   :  { %230 = vmatpush.bf16.msra.mxu1 %v348_v3  ;;  %v358_v18 = vld [vmem:[%s520_s2] ss:$0 sm:$0xff]  ;;  %s251_s2 = sshll.u32 %s523_s5, 4  ;;  %s252_s2 = int_to_ptr.hbm [resolvable:$true] %s251_s2 }
  0x15   :  { %v359_v25 = vld [vmem:[%s522_s4] ss:$0 sm:$0xff] }
  0x17   :  { %146 = vmatpush.bf16.msra.mxu0 %v339_v4 }
  0x18   :  { %231 = vmatpush.bf16.msra.mxu1 %v347_v5 }
  0x1b   :  { %147 = vmatpush.bf16.msra.mxu0 %v338_v6 }
  0x1c   :  { %232 = vmatpush.bf16.msra.mxu1 %v346_v7 }
  0x1f   :  { %148 = vmatpush.bf16.msra.mxu0 %v337_v8 }
  0x20   :  { %233 = vmatpush.bf16.msra.mxu1 %v345_v13 }
  0x23   :  { %149 = vmatpush.bf16.msra.mxu0 %v336_v9 }
  0x24   :  { %234 = vmatpush.bf16.msra.mxu1 %v344_v14 }
  0x27   :  { %150 = vmatpush.bf16.msra.mxu0 %v335_v10 }
  0x28   :  { %235 = vmatpush.bf16.msra.mxu1 %v343_v15 }
  0x2b   :  { %151 = vmatpush.bf16.msra.mxu0 %v334_v11 }
  0x2c   :  { %236 = vmatpush.bf16.msra.mxu1 %v342_v16 }
  0x2e   :  { %152 = vmatmul.bf16.vlgmr.msra.gmra.mxu0 %v333_v12 }
  0xab   :  { %v153_v17 = vpop.f32.mrf.mxu0 }
  0xac   :  { %v154_v19 = vadd.f32 %v358_v18, %v153_v17 }
  0xae   :  { %v158_v22 = vmax.f32 %v154_v19, 0.0 }
  0xb3   :  { %v155_v20 = vpop.f32.mrf.mxu0 }
  0xb4   :  { %v156_v21 = vadd.f32 %v358_v18, %v155_v20 }
  0xb6   :  { %v159_v23 = vmax.f32 %v156_v21, 0.0 }
  0xb8   :  { %v160_v24 = vpack.c.bf16 %v159_v23, %v158_v22 }
  0xba   :  { %237 = vmatmul.bf16.vlgmr.msra.gmra.mxu1 %v160_v24 }
 0x137   :  { %v238_v26 = vpop.f32.mrf.mxu1 }
 0x138   :  { %v239_v27 = vadd.f32 %v359_v25, %v238_v26 }
 0x13a   :  { %243 = vst [vmem:[#allocation8] sm:$0xff] %v239_v27 }
 0x13f   :  { %v240_v28 = vpop.f32.mrf.mxu1 }
 0x140   :  { %v241_v29 = vadd.f32 %v359_v25, %v240_v28 }
 0x142   :  { %244 = vst [vmem:[#allocation8 + $0x8] sm:$0xff] %v241_v29 }
 0x143   :  { %257 = dma.vmem_to_hbm [thread:$0]  %s250_s12, 256, %s252_s2, [#allocation4], %s468_s15, %s468_s15, %s469_s16  }
 0x144   :  { %460 = dma.done.wait [#allocation4], 256  }
 0x145   :  { %461 = vsyncadd [#allocation4], 4294967040 }
 0x146   :  { %262 = vsyncpa [#allocation3], 1 }
 0x147   :  { %263 = vsyncpa [#allocation6], 1 }
 0x148   :  { %264 = vsyncpa [#allocation4], 1 }

</bundles_post_ra>
